<compile_context>
chip_gen: v7x
topology: tpu7x:2x2x1
jax: 0.10.0
libtpu: 0.0.40
codegen_flags: <defaults>
</compile_context>

<pallas_src>
import jax
import jax.numpy as jnp
from jax.experimental import pallas as pl
from jax.experimental.pallas import tpu as pltpu


def head_kernel(x_ref, w_ref, b_ref, mask_ref, out_ref):
    # x_ref:    (TILE_N, H)  bf16/f32 encoder rows (one row tile)
    # w_ref:    (1, H)       f32 linear weight row
    # b_ref:    (1,)         f32 bias, SMEM scalar
    # mask_ref: (TILE_N, 1)  f32 attention mask (0/1)
    # out_ref:  (TILE_N, 1)  f32
    x = x_ref[...].astype(jnp.float32)                # upcast once; accumulate in f32
    w = w_ref[...]                                    # (1, H) broadcasts over rows
    # VPU multiply + XLU lane-reduce: row-wise dot with the single weight vector.
    logits = jnp.sum(x * w, axis=-1, keepdims=True) + b_ref[0]   # (TILE_N, 1) f32
    out_ref[...] = jax.nn.sigmoid(logits) * mask_ref[...]


def model_head(top_vec, weight, bias, mask_src, *, tile_n=2048):
    """sigmoid(Linear(top_vec)).squeeze(-1) * mask_src  via a row-tiled Pallas kernel."""
    B, S, H = top_vec.shape
    N = B * S

    x = top_vec.reshape(N, H)                         # keep encoder dtype (bf16)
    w = weight.reshape(1, H).astype(jnp.float32)      # (1, H) row
    b = bias.reshape(1).astype(jnp.float32)           # (1,)  SMEM scalar
    m = mask_src.reshape(N, 1).astype(jnp.float32)    # (N, 1)

    # Lane-aligned row tile, capped for v7x's 64 MiB VMEM (2 buffers of the x tile
    # dominate), and no bigger than needed for small inputs.
    tile_n = max(128, (tile_n // 128) * 128)
    tile_n = min(tile_n, pl.cdiv(N, 128) * 128)
    num_tiles = pl.cdiv(N, tile_n)
    n_pad = num_tiles * tile_n

    if n_pad != N:  # pad rows; padded rows have mask 0 and are sliced off below
        x = jnp.pad(x, ((0, n_pad - N), (0, 0)))
        m = jnp.pad(m, ((0, n_pad - N), (0, 0)))

    bytes_in = n_pad * H * x.dtype.itemsize

    out = pl.pallas_call(
        head_kernel,
        out_shape=jax.ShapeDtypeStruct((n_pad, 1), jnp.float32),
        grid=(num_tiles,),
        in_specs=[
            pl.BlockSpec((tile_n, H), lambda i: (i, 0)),            # x row tile
            pl.BlockSpec((1, H), lambda i: (0, 0)),                 # weight row
            pl.BlockSpec(memory_space=pltpu.MemorySpace.SMEM),      # bias scalar
            pl.BlockSpec((tile_n, 1), lambda i: (i, 0)),            # mask tile
        ],
        out_specs=pl.BlockSpec((tile_n, 1), lambda i: (i, 0)),
        compiler_params=pltpu.CompilerParams(
            dimension_semantics=("parallel",),                      # megacore on v7x
            vmem_limit_bytes=48 * 1024 * 1024,
        ),
        cost_estimate=pl.CostEstimate(
            flops=2 * n_pad * H + 4 * n_pad,
            transcendentals=n_pad,
            bytes_accessed=bytes_in + 2 * 4 * n_pad + 4 * H + 4,
        ),
    )(x, w, b, m)

    return out.reshape(n_pad)[:N].reshape(B, S)


def model_forward(src, mask_src, embedding, weight, bias):
    # TODO(synk): the real pretrained HF transformer encoder (get_model /
    # bart_t5_forward) is stood in by a deterministic embedding lookup.
    top_vec = embedding[src]                     # (B, S, H) bf16 -- plain-JAX glue
    # dropout(p=0.2) is identity at inference time.
    return model_head(top_vec, weight, bias, mask_src)


if __name__ == "__main__":
    B, S, H, VOCAB, PAD_ID = 2, 8, 32, 50, 0

    key = jax.random.PRNGKey(0)
    k_emb, k_w, k_b, k_src = jax.random.split(key, 4)

    # bf16 "encoder" output (halves HBM traffic of the mem-bound head kernel)
    embedding = (jax.random.normal(k_emb, (VOCAB, H), dtype=jnp.float32) * 0.1
                 ).astype(jnp.bfloat16)
    weight = jax.random.normal(k_w, (1, H), dtype=jnp.float32) * 0.1   # nn.Linear(H,1).weight
    bias = jax.random.normal(k_b, (1,), dtype=jnp.float32) * 0.1       # nn.Linear(H,1).bias

    # deterministic token ids; pad the tail of each sequence with PAD_ID
    src = jax.random.randint(k_src, (B, S), 1, VOCAB, dtype=jnp.int32)
    src = src.at[0, 6:].set(PAD_ID)
    src = src.at[1, 5:].set(PAD_ID)
    mask_src = (src != PAD_ID).astype(jnp.int32)

    out = model_forward(src, mask_src, embedding, weight, bias)
    out = jax.block_until_ready(out)

    # plain-JAX reference (same bf16 activations, f32 math)
    top_vec = embedding[src].astype(jnp.float32)
    ref = jax.nn.sigmoid(jnp.einsum("bsh,h->bs", top_vec, weight[0]) + bias[0])
    ref = ref * mask_src.astype(jnp.float32)
    assert out.shape == (B, S)
    assert jnp.allclose(out, ref, atol=1e-5), (out, ref)

    print("KERNEL_OK")
</pallas_src>

<mosaic_0001>
module attributes {stable_mosaic.version = 11 : i64} {
  func.func @head_kernel(%arg0: i32, %arg1: memref<128x32xbf16, #tpu.memory_space<vmem>>, %arg2: memref<1x32xf32, #tpu.memory_space<vmem>>, %arg3: memref<1xf32, #tpu.memory_space<smem>>, %arg4: memref<128x1xf32, #tpu.memory_space<vmem>>, %arg5: memref<128x1xf32, #tpu.memory_space<vmem>>) attributes {dimension_semantics = [#tpu.dimension_semantics<parallel>], iteration_bounds = array<i64: 1>, scalar_prefetch = 0 : i64, scratch_operands = 0 : i64, tpu.core_type = #tpu.core_type<tc>, window_params = [{transform_indices = @transform_0, window_bounds = array<i64: 128, 32>}, {pipeline_mode = #tpu.pipeline_mode<synchronous>, transform_indices = @transform_1, window_bounds = array<i64: 1, 32>}, {transform_indices = @transform_2, window_bounds = array<i64: 1>}, {transform_indices = @transform_3, window_bounds = array<i64: 128, 1>}, {transform_indices = @transform_4, window_bounds = array<i64: 128, 1>}]} {
    %c0 = arith.constant 0 : index
    %c0_0 = arith.constant 0 : index
    %0 = vector.load %arg1[%c0, %c0_0] : memref<128x32xbf16, #tpu.memory_space<vmem>>, vector<128x32xbf16>
    %1 = arith.extf %0 : vector<128x32xbf16> to vector<128x32xf32>
    %c0_1 = arith.constant 0 : index
    %c0_2 = arith.constant 0 : index
    %2 = vector.load %arg2[%c0_1, %c0_2] : memref<1x32xf32, #tpu.memory_space<vmem>>, vector<1x32xf32>
    %3 = vector.broadcast %2 : vector<1x32xf32> to vector<128x32xf32>
    %4 = arith.mulf %1, %3 : vector<128x32xf32>
    %cst = arith.constant dense<0.000000e+00> : vector<128xf32>
    %5 = vector.multi_reduction <add>, %4, %cst [1] : vector<128x32xf32> to vector<128xf32>
    %6 = vector.shape_cast %5 : vector<128xf32> to vector<128x1xf32>
    %c0_3 = arith.constant 0 : index
    %7 = memref.load %arg3[%c0_3] : memref<1xf32, #tpu.memory_space<smem>>
    %8 = vector.broadcast %7 : f32 to vector<128x1xf32>
    %9 = arith.addf %6, %8 : vector<128x1xf32>
    %10 = arith.negf %9 : vector<128x1xf32>
    %11 = math.exp %10 : vector<128x1xf32>
    %cst_4 = arith.constant 1.000000e+00 : f32
    %12 = vector.broadcast %cst_4 : f32 to vector<128x1xf32>
    %13 = arith.addf %12, %11 : vector<128x1xf32>
    %14 = arith.divf %12, %13 : vector<128x1xf32>
    %c0_5 = arith.constant 0 : index
    %c0_6 = arith.constant 0 : index
    %15 = vector.load %arg4[%c0_5, %c0_6] : memref<128x1xf32, #tpu.memory_space<vmem>>, vector<128x1xf32>
    %16 = arith.mulf %14, %15 : vector<128x1xf32>
    %c0_7 = arith.constant 0 : index
    %c0_8 = arith.constant 0 : index
    %17 = vector.load %arg5[%c0_7, %c0_8] : memref<128x1xf32, #tpu.memory_space<vmem>>, vector<128x1xf32>
    tpu.vector_store %arg5[%c0_7, %c0_8], %16 {strides = array<i32>} : memref<128x1xf32, #tpu.memory_space<vmem>>, vector<128x1xf32>,
    return
  }
  func.func @transform_0(%arg0: i32) -> (i32, i32) {
    %c0_i32 = arith.constant 0 : i32
    %c0_i32_0 = arith.constant 0 : i32
    return %arg0, %c0_i32 : i32, i32
  }
  func.func @transform_1(%arg0: i32) -> (i32, i32) {
    %c0_i32 = arith.constant 0 : i32
    %c0_i32_0 = arith.constant 0 : i32
    %c0_i32_1 = arith.constant 0 : i32
    return %c0_i32, %c0_i32_0 : i32, i32
  }
  func.func @transform_2(%arg0: i32) -> i32 {
    %c0_i32 = arith.constant 0 : i32
    %c0_i32_0 = arith.constant 0 : i32
    return %c0_i32 : i32
  }
  func.func @transform_3(%arg0: i32) -> (i32, i32) {
    %c0_i32 = arith.constant 0 : i32
    %c0_i32_0 = arith.constant 0 : i32
    return %arg0, %c0_i32 : i32, i32
  }
  func.func @transform_4(%arg0: i32) -> (i32, i32) {
    %c0_i32 = arith.constant 0 : i32
    %c0_i32_0 = arith.constant 0 : i32
    return %arg0, %c0_i32 : i32, i32
  }
}

</mosaic_0001>

<bundles_post_ra>
// kernel: tpu_custom_call.1
= control target key start
LH: loop header
LB: loop body
LE: loop exit
PB: predicated region body
PF: predicated region fallthrough
CT: control target
= control target key end

     0   :  { %vm73_vm0 = vcmask 261120   ;;  %vm268_vm1 = vcmask 7168   ;;  %s628_s0 = inlined_call_operand.vmem [shape: bf16[128,32], index: 0, kind: input, shape index: {}]   ;;  %s629_s1 = inlined_call_operand.vmem [shape: f32[1,32], index: 1, kind: input, shape index: {}]   ;;  %s630_s2 = inlined_call_operand.<no memory space> [shape: f32[1], index: 2, kind: input, shape index: {}]   ;;  %s631_s3 = inlined_call_operand.vmem [shape: f32[128,1], index: 3, kind: input, shape index: {}]   ;;  %s632_s4 = inlined_call_operand.vmem [shape: f32[128,1], index: 4, kind: output, shape index: {}]  }
   0x1   :  { %v338_v0 = vld [vmem:[%s628_s0 + $0x8] sm:$0xff]   ;;  %v440_v1 = vld [vmem:[%s629_s1] ss:$0 sm:$0xff]  ;;  %v339_v7 = vld [vmem:[%s628_s0 + $0x10] sm:$0xff]   ;;  %v498_v57 = vstv %s630_s2 }
   0x2   :  { %v307_v2 = vld [vmem:[%s628_s0] sm:$0xff]   ;;  %v312_v3 = vunpack.c.l.bf16 %v338_v0  ;;  %v313_v5 = vunpack.c.h.bf16 %v338_v0  ;;  %v317_v8 = vunpack.c.h.bf16 %v339_v7  ;;  %v316_v9 = vunpack.c.l.bf16 %v339_v7  ;;  %v340_v14 = vld [vmem:[%s628_s0 + $0x18] sm:$0xff]   ;;  %v342_v30 = vld [vmem:[%s628_s0 + $0x28] sm:$0xff]  }
   0x3   :  { %v308_v4 = vunpack.c.l.bf16 %v307_v2  ;;  %v309_v6 = vunpack.c.h.bf16 %v307_v2  ;;  %v321_v17 = vunpack.c.h.bf16 %v340_v14  ;;  %v320_v18 = vunpack.c.l.bf16 %v340_v14  ;;  %v341_v23 = vld [vmem:[%s628_s0 + $0x20] sm:$0xff]   ;;  %v343_v37 = vld [vmem:[%s628_s0 + $0x30] sm:$0xff]   ;;  %v344_v44 = vld [vmem:[%s628_s0 + $0x38] sm:$0xff]  }
   0x4   :  { %v59_v10 = vmul.f32 %v312_v3, %v440_v1  ;;  %v60_v12 = vmul.f32 %v313_v5, %v440_v1  ;;  %v62_v21 = vmul.f32 %v317_v8, %v440_v1  ;;  %v61_v22 = vmul.f32 %v316_v9, %v440_v1 }
   0x5   :  { %v57_v11 = vmul.f32 %v308_v4, %v440_v1  ;;  %v58_v13 = vmul.f32 %v309_v6, %v440_v1  ;;  %v64_v24 = vmul.f32 %v321_v17, %v440_v1  ;;  %v63_v25 = vmul.f32 %v320_v18, %v440_v1 }
   0x6   :  { %v80_v15 = vsel %vm73_vm0, %v59_v10, 0.0  ;;  %v83_v19 = vsel %vm73_vm0, %v60_v12, 0.0  ;;  %v89_v26 = vsel %vm73_vm0, %v62_v21, 0.0  ;;  %v86_v27 = vsel %vm73_vm0, %v61_v22, 0.0 }
   0x7   :  { %v74_v16 = vsel %vm73_vm0, %v57_v11, 0.0  ;;  %81 = vadd.xlane.f32.xlu1 %v80_v15  ;;  %v77_v20 = vsel %vm73_vm0, %v58_v13, 0.0  ;;  %v325_v28 = vunpack.c.h.bf16 %v341_v23  ;;  %v324_v29 = vunpack.c.l.bf16 %v341_v23 }
   0x8   :  { %75 = vadd.xlane.f32.xlu0 %v74_v16  ;;  %v95_v31 = vsel %vm73_vm0, %v64_v24, 0.0  ;;  %v92_v32 = vsel %vm73_vm0, %v63_v25, 0.0  ;;  %v329_v35 = vunpack.c.h.bf16 %v342_v30  ;;  %v328_v36 = vunpack.c.l.bf16 %v342_v30 }
   0x9   :  { %v66_v33 = vmul.f32 %v325_v28, %v440_v1  ;;  %v65_v34 = vmul.f32 %v324_v29, %v440_v1  ;;  %v333_v38 = vunpack.c.h.bf16 %v343_v37  ;;  %v332_v39 = vunpack.c.l.bf16 %v343_v37 }
   0xa   :  { %v68_v42 = vmul.f32 %v329_v35, %v440_v1  ;;  %v67_v43 = vmul.f32 %v328_v36, %v440_v1  ;;  %v337_v45 = vunpack.c.h.bf16 %v344_v44  ;;  %v336_v46 = vunpack.c.l.bf16 %v344_v44 }
   0xb   :  { %84 = vadd.xlane.f32.xlu1 %v83_v19  ;;  %v101_v40 = vsel %vm73_vm0, %v66_v33, 0.0  ;;  %v98_v41 = vsel %vm73_vm0, %v65_v34, 0.0  ;;  %v70_v49 = vmul.f32 %v333_v38, %v440_v1  ;;  %v69_v50 = vmul.f32 %v332_v39, %v440_v1 }
   0xc   :  { %78 = vadd.xlane.f32.xlu0 %v77_v20  ;;  %v107_v47 = vsel %vm73_vm0, %v68_v42, 0.0  ;;  %v104_v48 = vsel %vm73_vm0, %v67_v43, 0.0  ;;  %v72_v53 = vmul.f32 %v337_v45, %v440_v1  ;;  %v71_v54 = vmul.f32 %v336_v46, %v440_v1  ;;  %v238_v46 = vld [vmem:[%s631_s3 + $0x10] sm:$0xff] }
   0xd   :  { %v113_v51 = vsel %vm73_vm0, %v70_v49, 0.0  ;;  %v110_v52 = vsel %vm73_vm0, %v69_v50, 0.0 }
   0xe   :  { %v119_v55 = vsel %vm73_vm0, %v72_v53, 0.0  ;;  %v116_v56 = vsel %vm73_vm0, %v71_v54, 0.0 }
   0xf   :  { %90 = vadd.xlane.f32.xlu1 %v89_v26 }
  0x10   :  { %87 = vadd.xlane.f32.xlu0 %v86_v27 }
  0x13   :  { %96 = vadd.xlane.f32.xlu1 %v95_v31 }
  0x14   :  { %93 = vadd.xlane.f32.xlu0 %v92_v32 }
  0x17   :  { %102 = vadd.xlane.f32.xlu1 %v101_v40 }
  0x18   :  { %99 = vadd.xlane.f32.xlu0 %v98_v41 }
  0x1b   :  { %108 = vadd.xlane.f32.xlu1 %v107_v47 }
  0x1c   :  { %105 = vadd.xlane.f32.xlu0 %v104_v48  ;;  %v236_v48 = vld [vmem:[%s631_s3] sm:$0xff] }
  0x1f   :  { %114 = vadd.xlane.f32.xlu1 %v113_v51 }
  0x20   :  { %111 = vadd.xlane.f32.xlu0 %v110_v52 }
  0x23   :  { %120 = vadd.xlane.f32.xlu1 %v119_v55 }
  0x24   :  { %117 = vadd.xlane.f32.xlu0 %v116_v56 }
  0x94   :  { %v82_v58 = vpop.xlane.xlu1 %81 }
  0x95   :  { %v76_v59 = vpop.xlane.xlu0 %75  ;;  %v126_v60 = vadd.f32 %v498_v57, %v82_v58 }
  0x96   :  { %v124_v61 = vadd.f32 %v498_v57, %v76_v59 }
  0x97   :  { %v292_v62 = vmul.f32 -1.442695, %v126_v60 }
  0x98   :  { %v290_v63 = vmul.f32 -1.442695, %v124_v61  ;;  %v85_v0 = vpop.xlane.xlu1 %84 }
  0x99   :  { %v79_v1 = vpop.xlane.xlu0 %78  ;;  %345 = vpow2.f32 %v292_v62  ;;  %v127_v2 = vadd.f32 %v498_v57, %v85_v0  ;;  %v239_v62 = vld [vmem:[%s631_s3 + $0x18] sm:$0xff]  ;;  %v237_v0 = vld [vmem:[%s631_s3 + $0x8] sm:$0xff] }
  0x9a   :  { %v125_v3 = vadd.f32 %v498_v57, %v79_v1  ;;  %347 = vpow2.f32 %v290_v63 }
  0x9b   :  { %v293_v4 = vmul.f32 -1.442695, %v127_v2 }
  0x9c   :  { %v291_v5 = vmul.f32 -1.442695, %v125_v3  ;;  %v91_v6 = vpop.xlane.xlu1 %90 }
  0x9d   :  { %v88_v7 = vpop.xlane.xlu0 %87  ;;  %349 = vpow2.f32 %v293_v4  ;;  %v129_v8 = vadd.f32 %v498_v57, %v91_v6 }
  0x9e   :  { %v128_v9 = vadd.f32 %v498_v57, %v88_v7  ;;  %351 = vpow2.f32 %v291_v5 }
  0x9f   :  { %v295_v10 = vmul.f32 -1.442695, %v129_v8 }
  0xa0   :  { %v294_v11 = vmul.f32 -1.442695, %v128_v9  ;;  %v97_v12 = vpop.xlane.xlu1 %96  ;;  %v241_v9 = vld [vmem:[%s631_s3 + $0x28] sm:$0xff] }
  0xa1   :  { %v94_v13 = vpop.xlane.xlu0 %93  ;;  %353 = vpow2.f32 %v295_v10  ;;  %v131_v14 = vadd.f32 %v498_v57, %v97_v12 }
  0xa2   :  { %v130_v15 = vadd.f32 %v498_v57, %v94_v13  ;;  %355 = vpow2.f32 %v294_v11  ;;  %v240_v11 = vld [vmem:[%s631_s3 + $0x20] sm:$0xff] }
  0xa3   :  { %v346_v16 = vpop.eup %345  ;;  %v297_v17 = vmul.f32 -1.442695, %v131_v14 }
  0xa4   :  { %v348_v18 = vpop.eup %347  ;;  %v190_v19 = vadd.f32 1.0, %v346_v16  ;;  %v296_v20 = vmul.f32 -1.442695, %v130_v15  ;;  %v103_v21 = vpop.xlane.xlu1 %102 }
  0xa5   :  { %v100_v22 = vpop.xlane.xlu0 %99  ;;  %v188_v23 = vadd.f32 1.0, %v348_v18  ;;  %357 = vpow2.f32 %v297_v17  ;;  %v133_v24 = vadd.f32 %v498_v57, %v103_v21 }
  0xa6   :  { %v132_v25 = vadd.f32 %v498_v57, %v100_v22  ;;  %359 = vrcp.f32 %v190_v19  ;;  %v243_v19 = vld [vmem:[%s631_s3 + $0x38] sm:$0xff] }
  0xa7   :  { %v350_v26 = vpop.eup %349  ;;  %361 = vrcp.f32 %v188_v23  ;;  %v299_v27 = vmul.f32 -1.442695, %v133_v24 }
  0xa8   :  { %v352_v28 = vpop.eup %351  ;;  %v191_v29 = vadd.f32 1.0, %v350_v26  ;;  %363 = vpow2.f32 %v296_v20  ;;  %v298_v30 = vmul.f32 -1.442695, %v132_v25  ;;  %v109_v31 = vpop.xlane.xlu1 %108  ;;  %v242_v26 = vld [vmem:[%s631_s3 + $0x30] sm:$0xff] }
  0xa9   :  { %v106_v32 = vpop.xlane.xlu0 %105  ;;  %v189_v33 = vadd.f32 1.0, %v352_v28  ;;  %365 = vpow2.f32 %v299_v27  ;;  %v135_v34 = vadd.f32 %v498_v57, %v109_v31  ;;  %v245_v27 = vld [vmem:[%s631_s3 + $0x48] sm:$0xff] }
  0xaa   :  { %v134_v35 = vadd.f32 %v498_v57, %v106_v32  ;;  %367 = vrcp.f32 %v191_v29 }
  0xab   :  { %v354_v36 = vpop.eup %353  ;;  %369 = vrcp.f32 %v189_v33  ;;  %v301_v37 = vmul.f32 -1.442695, %v135_v34  ;;  %v244_v34 = vld [vmem:[%s631_s3 + $0x40] sm:$0xff] }
  0xac   :  { %v356_v38 = vpop.eup %355  ;;  %v193_v39 = vadd.f32 1.0, %v354_v36  ;;  %371 = vpow2.f32 %v298_v30  ;;  %v300_v40 = vmul.f32 -1.442695, %v134_v35  ;;  %v115_v41 = vpop.xlane.xlu1 %114  ;;  %v247_v36 = vld [vmem:[%s631_s3 + $0x58] sm:$0xff] }
  0xad   :  { %v112_v42 = vpop.xlane.xlu0 %111  ;;  %v192_v43 = vadd.f32 1.0, %v356_v38  ;;  %373 = vpow2.f32 %v301_v37  ;;  %v137_v44 = vadd.f32 %v498_v57, %v115_v41 }
  0xae   :  { %v136_v45 = vadd.f32 %v498_v57, %v112_v42  ;;  %375 = vrcp.f32 %v193_v39 }
  0xaf   :  { %v358_v47 = vpop.eup %357  ;;  %377 = vrcp.f32 %v192_v43  ;;  %v303_v49 = vmul.f32 -1.442695, %v137_v44  ;;  %v246_v43 = vld [vmem:[%s631_s3 + $0x50] sm:$0xff]  ;;  %v249_v44 = vld [vmem:[%s631_s3 + $0x68] sm:$0xff] }
  0xb0   :  { %v302_v50 = vmul.f32 -1.442695, %v136_v45  ;;  %v360_v51 = vpop.eup %359  ;;  %v195_v52 = vadd.f32 1.0, %v358_v47  ;;  %379 = vpow2.f32 %v300_v40  ;;  %v121_v53 = vpop.xlane.xlu1 %120 }
  0xb1   :  { %v118_v54 = vpop.xlane.xlu0 %117  ;;  %v362_v55 = vpop.eup %361  ;;  %v254_v56 = vmul.f32 %v360_v51, %v238_v46  ;;  %381 = vpow2.f32 %v303_v49  ;;  %v139_v58 = vadd.f32 %v498_v57, %v121_v53  ;;  %v250_v53 = vld [vmem:[%s631_s3 + $0x70] sm:$0xff] }
  0xb2   :  { %v138_v59 = vadd.f32 %v498_v57, %v118_v54  ;;  %v364_v60 = vpop.eup %363  ;;  %v252_v61 = vmul.f32 %v362_v55, %v236_v48  ;;  %383 = vrcp.f32 %v195_v52  ;;  %v248_v48 = vld [vmem:[%s631_s3 + $0x60] sm:$0xff]  ;;  %v251_v52 = vld [vmem:[%s631_s3 + $0x78] sm:$0xff] }
  0xb3   :  { %v366_v63 = vpop.eup %365  ;;  %271 = vst.msk [vmem:[%s632_s4 + $0x10] sm:$0xff] %vm268_vm1, %v254_v56  ;;  %v194_v1 = vadd.f32 1.0, %v364_v60  ;;  %385 = vpow2.f32 %v302_v50  ;;  %v305_v57 = vmul.f32 -1.442695, %v139_v58 }
  0xb4   :  { %v368_v2 = vpop.eup %367  ;;  %269 = vst.msk [vmem:[%s632_s4] sm:$0xff] %vm268_vm1, %v252_v61  ;;  %v197_v3 = vadd.f32 1.0, %v366_v63  ;;  %v304_v4 = vmul.f32 -1.442695, %v138_v59 }
  0xb5   :  { %v370_v5 = vpop.eup %369  ;;  %v255_v6 = vmul.f32 %v368_v2, %v239_v62  ;;  %387 = vrcp.f32 %v194_v1 }
  0xb6   :  { %v372_v7 = vpop.eup %371  ;;  %v253_v8 = vmul.f32 %v370_v5, %v237_v0  ;;  %389 = vrcp.f32 %v197_v3 }
  0xb7   :  { %v374_v10 = vpop.eup %373  ;;  %272 = vst.msk [vmem:[%s632_s4 + $0x18] sm:$0xff] %vm268_vm1, %v255_v6  ;;  %v196_v12 = vadd.f32 1.0, %v372_v7  ;;  %391 = vpow2.f32 %v305_v57 }
  0xb8   :  { %v376_v13 = vpop.eup %375  ;;  %270 = vst.msk [vmem:[%s632_s4 + $0x8] sm:$0xff] %vm268_vm1, %v253_v8  ;;  %v199_v14 = vadd.f32 1.0, %v374_v10  ;;  %393 = vpow2.f32 %v304_v4 }
  0xb9   :  { %v378_v15 = vpop.eup %377  ;;  %v257_v16 = vmul.f32 %v376_v13, %v241_v9  ;;  %395 = vrcp.f32 %v196_v12 }
  0xba   :  { %v380_v17 = vpop.eup %379  ;;  %v256_v18 = vmul.f32 %v378_v15, %v240_v11  ;;  %397 = vrcp.f32 %v199_v14 }
  0xbb   :  { %v382_v20 = vpop.eup %381  ;;  %274 = vst.msk [vmem:[%s632_s4 + $0x28] sm:$0xff] %vm268_vm1, %v257_v16  ;;  %v198_v21 = vadd.f32 1.0, %v380_v17 }
  0xbc   :  { %v384_v22 = vpop.eup %383  ;;  %273 = vst.msk [vmem:[%s632_s4 + $0x20] sm:$0xff] %vm268_vm1, %v256_v18  ;;  %v201_v23 = vadd.f32 1.0, %v382_v20 }
  0xbd   :  { %v386_v24 = vpop.eup %385  ;;  %v259_v25 = vmul.f32 %v384_v22, %v243_v19  ;;  %399 = vrcp.f32 %v198_v21 }
  0xbe   :  { %401 = vrcp.f32 %v201_v23  ;;  %v200_v28 = vadd.f32 1.0, %v386_v24 }
  0xbf   :  { %v388_v29 = vpop.eup %387  ;;  %276 = vst.msk [vmem:[%s632_s4 + $0x38] sm:$0xff] %vm268_vm1, %v259_v25 }
  0xc0   :  { %v390_v30 = vpop.eup %389  ;;  %v258_v31 = vmul.f32 %v388_v29, %v242_v26  ;;  %403 = vrcp.f32 %v200_v28 }
  0xc1   :  { %v392_v32 = vpop.eup %391  ;;  %v261_v33 = vmul.f32 %v390_v30, %v245_v27 }
  0xc2   :  { %v394_v35 = vpop.eup %393  ;;  %275 = vst.msk [vmem:[%s632_s4 + $0x30] sm:$0xff] %vm268_vm1, %v258_v31  ;;  %v203_v37 = vadd.f32 1.0, %v392_v32 }
  0xc3   :  { %v396_v38 = vpop.eup %395  ;;  %278 = vst.msk [vmem:[%s632_s4 + $0x48] sm:$0xff] %vm268_vm1, %v261_v33  ;;  %v202_v39 = vadd.f32 1.0, %v394_v35 }
  0xc4   :  { %v398_v40 = vpop.eup %397  ;;  %v260_v41 = vmul.f32 %v396_v38, %v244_v34  ;;  %405 = vrcp.f32 %v203_v37 }
  0xc5   :  { %v263_v42 = vmul.f32 %v398_v40, %v247_v36  ;;  %407 = vrcp.f32 %v202_v39 }
  0xc6   :  { %277 = vst.msk [vmem:[%s632_s4 + $0x40] sm:$0xff] %vm268_vm1, %v260_v41 }
  0xc7   :  { %v400_v45 = vpop.eup %399  ;;  %280 = vst.msk [vmem:[%s632_s4 + $0x58] sm:$0xff] %vm268_vm1, %v263_v42 }
  0xc8   :  { %v402_v46 = vpop.eup %401  ;;  %v262_v47 = vmul.f32 %v400_v45, %v246_v43 }
  0xc9   :  { %v265_v49 = vmul.f32 %v402_v46, %v249_v44 }
  0xca   :  { %v404_v50 = vpop.eup %403  ;;  %279 = vst.msk [vmem:[%s632_s4 + $0x50] sm:$0xff] %vm268_vm1, %v262_v47 }
  0xcb   :  { %282 = vst.msk [vmem:[%s632_s4 + $0x68] sm:$0xff] %vm268_vm1, %v265_v49  ;;  %v264_v51 = vmul.f32 %v404_v50, %v248_v48 }
  0xcd   :  { %281 = vst.msk [vmem:[%s632_s4 + $0x60] sm:$0xff] %vm268_vm1, %v264_v51 }
  0xce   :  { %v406_v54 = vpop.eup %405 }
  0xcf   :  { %v408_v55 = vpop.eup %407  ;;  %v267_v56 = vmul.f32 %v406_v54, %v251_v52 }
  0xd0   :  { %v266_v58 = vmul.f32 %v408_v55, %v250_v53 }
  0xd1   :  { %284 = vst.msk [vmem:[%s632_s4 + $0x78] sm:$0xff] %vm268_vm1, %v267_v56 }
  0xd2   :  { %283 = vst.msk [vmem:[%s632_s4 + $0x70] sm:$0xff] %vm268_vm1, %v266_v58 }

</bundles_post_ra>
